<compile_context>
chip_gen: v6e
topology: v6e:2x2x1
jax: 0.10.0
libtpu: 0.0.40
codegen_flags: <defaults>
</compile_context>

<pallas_src>
import jax
import jax.numpy as jnp
from jax.experimental import pallas as pl
from jax.experimental.pallas import tpu as pltpu

HIDDEN = 128   # hidden layer width (nn.Linear(in_dim, 128))
LANE = 128     # TPU vreg lane width


def _round_up(x, m):
    return ((x + m - 1) // m) * m


def _make_actor_kernel(kpad, row_bh, row_bheads):
    """Build the kernel with static layout offsets baked in."""

    def kernel(acts_ref, params_ref, out_ref):
        # Activations slab: lanes [0, kpad) = state (zero-padded),
        #                   lanes [kpad, kpad+128) = noise (zero-padded).
        state = acts_ref[:, :kpad]                       # [B, kpad]
        noise = acts_ref[:, kpad:]                       # [B, 128]

        # Params slab (all slices sublane-aligned to 8, lane-aligned to 128):
        w_h = params_ref[:kpad, :HIDDEN]                 # [kpad, 128]
        w_heads = params_ref[kpad:kpad + HIDDEN, :]      # [128, 256]
        b_h = params_ref[row_bh:row_bh + 1, :HIDDEN]     # [1, 128]
        b_heads = params_ref[row_bheads:row_bheads + 1, :]   # [1, 256]

        # hidden = relu(state @ W_h + b_h)   (zero pad rows/lanes contribute 0)
        x = jnp.dot(state, w_h, preferred_element_type=jnp.float32) + b_h
        x = jnp.maximum(x, 0.0)

        # One fused head matmul over both heads: [B, 256]
        heads = jnp.dot(x, w_heads, preferred_element_type=jnp.float32) + b_heads

        # mu = tanh(.) * 2 ; padding lanes stay exactly 0 (tanh(0) = 0).
        mu = jnp.tanh(heads[:, :LANE]) * 2.0
        # std = exp(softplus(z)) == 1 + exp(z)  (exact algebraic identity).
        std = 1.0 + jnp.exp(heads[:, LANE:])
        # action ~ Normal(mu, std) via mu + std * eps; noise padding is 0.
        action = mu + std * noise

        # Three vreg-aligned, unmasked stores (no concat, no masked store).
        out_ref[:, 0 * LANE:1 * LANE] = action
        out_ref[:, 1 * LANE:2 * LANE] = mu
        out_ref[:, 2 * LANE:3 * LANE] = std

    return kernel


def pack_actor_params(w_h, b_h, w_mu, b_mu, w_ls, b_ls):
    """One-time packing of all Actor parameters into a single aligned slab.

    Rows [0, kpad)            : W_h  (zero-padded to kpad rows), lanes 0..127
    Rows [kpad, kpad+128)     : fused head weights: W_mu in lanes 0..out-1,
                                W_log_std in lanes 128..128+out-1
    Row  kpad+128             : b_h in lanes 0..127
    Row  kpad+136             : b_mu in lanes 0..out-1, b_log_std in 128..128+out-1
    """
    in_dim = w_h.shape[0]
    out_dim = w_mu.shape[1]
    kpad = _round_up(in_dim, LANE)
    row_bh = kpad + HIDDEN
    row_bheads = row_bh + 8
    n_rows = row_bheads + 8

    p = jnp.zeros((n_rows, 2 * LANE), jnp.float32)
    p = p.at[:in_dim, :HIDDEN].set(w_h)
    p = p.at[kpad:kpad + HIDDEN, :out_dim].set(w_mu)
    p = p.at[kpad:kpad + HIDDEN, LANE:LANE + out_dim].set(w_ls)
    p = p.at[row_bh, :HIDDEN].set(jnp.reshape(b_h, (HIDDEN,)))
    p = p.at[row_bheads, :out_dim].set(jnp.reshape(b_mu, (out_dim,)))
    p = p.at[row_bheads, LANE:LANE + out_dim].set(jnp.reshape(b_ls, (out_dim,)))
    return p


@jax.jit
def actor_forward(params, state, noise):
    """state: [B, in_dim], noise: [B, out_dim], params: pre-packed slab."""
    B, in_dim = state.shape
    out_dim = noise.shape[1]
    kpad = _round_up(in_dim, LANE)
    row_bh = kpad + HIDDEN
    row_bheads = row_bh + 8

    # Single activations slab: state in lanes [0, in_dim), noise at lane kpad.
    acts = jnp.zeros((B, kpad + LANE), jnp.float32)
    acts = acts.at[:, :in_dim].set(state)
    acts = acts.at[:, kpad:kpad + out_dim].set(noise)

    vmem = pl.BlockSpec(memory_space=pltpu.MemorySpace.VMEM)
    packed = pl.pallas_call(
        _make_actor_kernel(kpad, row_bh, row_bheads),
        out_shape=jax.ShapeDtypeStruct((B, 3 * LANE), jnp.float32),
        in_specs=[vmem, vmem],
        out_specs=vmem,
    )(acts, params)

    action = packed[:, :out_dim]
    mu = packed[:, LANE:LANE + out_dim]
    std = packed[:, 2 * LANE:2 * LANE + out_dim]
    return action, mu, std


if __name__ == "__main__":
    B, IN_DIM, OUT_DIM = 8, 32, 4

    key = jax.random.PRNGKey(0)
    ks = jax.random.split(key, 8)

    # Deterministic parameter init (mirrors nn.Linear + init_uniformly on
    # the mu / log_std heads with range 3e-3).
    bound_h = 1.0 / jnp.sqrt(IN_DIM)
    w_h = jax.random.uniform(ks[0], (IN_DIM, HIDDEN), jnp.float32, -bound_h, bound_h)
    b_h = jax.random.uniform(ks[1], (1, HIDDEN), jnp.float32, -bound_h, bound_h)

    init_w = 3e-3
    w_mu = jax.random.uniform(ks[2], (HIDDEN, OUT_DIM), jnp.float32, -init_w, init_w)
    b_mu = jax.random.uniform(ks[3], (1, OUT_DIM), jnp.float32, -init_w, init_w)
    w_ls = jax.random.uniform(ks[4], (HIDDEN, OUT_DIM), jnp.float32, -init_w, init_w)
    b_ls = jax.random.uniform(ks[5], (1, OUT_DIM), jnp.float32, -init_w, init_w)

    # One-time packing (hoisted out of the per-step path).
    params = pack_actor_params(w_h, b_h, w_mu, b_mu, w_ls, b_ls)

    # Example state and the standard-normal noise used for dist.sample().
    state = jax.random.normal(ks[6], (B, IN_DIM), jnp.float32)
    noise = jax.random.normal(ks[7], (B, OUT_DIM), jnp.float32)

    action, mu, std = actor_forward(params, state, noise)
    jax.block_until_ready((action, mu, std))

    # Sanity check against a pure-JAX reference of the original math.
    x_ref = jnp.maximum(state @ w_h + b_h, 0.0)
    mu_ref = jnp.tanh(x_ref @ w_mu + b_mu) * 2.0
    std_ref = jnp.exp(jax.nn.softplus(x_ref @ w_ls + b_ls))
    act_ref = mu_ref + std_ref * noise
    assert jnp.allclose(mu, mu_ref, atol=1e-5)
    assert jnp.allclose(std, std_ref, atol=1e-5)
    assert jnp.allclose(action, act_ref, atol=1e-5)

    print("KERNEL_OK")
</pallas_src>

<mosaic_0001>
module attributes {stable_mosaic.version = 11 : i64} {
  func.func @kernel(%arg0: memref<8x256xf32, #tpu.memory_space<vmem>>, %arg1: memref<272x256xf32, #tpu.memory_space<vmem>>, %arg2: memref<8x384xf32, #tpu.memory_space<vmem>>) attributes {dimension_semantics = [], scalar_prefetch = 0 : i64, scratch_operands = 0 : i64, tpu.core_type = #tpu.core_type<tc>} {
    %c0 = arith.constant 0 : index
    %c0_0 = arith.constant 0 : index
    %0 = vector.load %arg0[%c0, %c0_0] : memref<8x256xf32, #tpu.memory_space<vmem>>, vector<8x128xf32>
    %c0_1 = arith.constant 0 : index
    %c128 = arith.constant 128 : index
    %1 = vector.load %arg0[%c0_1, %c128] : memref<8x256xf32, #tpu.memory_space<vmem>>, vector<8x128xf32>
    %c0_2 = arith.constant 0 : index
    %c0_3 = arith.constant 0 : index
    %2 = vector.load %arg1[%c0_2, %c0_3] : memref<272x256xf32, #tpu.memory_space<vmem>>, vector<128x128xf32>
    %c128_4 = arith.constant 128 : index
    %c0_5 = arith.constant 0 : index
    %3 = vector.load %arg1[%c128_4, %c0_5] : memref<272x256xf32, #tpu.memory_space<vmem>>, vector<128x256xf32>
    %c256 = arith.constant 256 : index
    %c0_6 = arith.constant 0 : index
    %4 = vector.load %arg1[%c256, %c0_6] : memref<272x256xf32, #tpu.memory_space<vmem>>, vector<1x128xf32>
    %c264 = arith.constant 264 : index
    %c0_7 = arith.constant 0 : index
    %5 = vector.load %arg1[%c264, %c0_7] : memref<272x256xf32, #tpu.memory_space<vmem>>, vector<1x256xf32>
    %cst = arith.constant dense<0.000000e+00> : vector<8x128xf32>
    %6 = tpu.matmul %0, %2, %cst {dimension_numbers = #tpu.dot_dimension_numbers<[1], [0], [0], [1], [0, 0, 1, 1], [], []>} : vector<8x128xf32>, vector<128x128xf32>, vector<8x128xf32> -> vector<8x128xf32>
    %7 = vector.broadcast %4 : vector<1x128xf32> to vector<8x128xf32>
    %8 = arith.addf %6, %7 : vector<8x128xf32>
    %cst_8 = arith.constant 0.000000e+00 : f32
    %9 = vector.broadcast %cst_8 : f32 to vector<8x128xf32>
    %10 = arith.maximumf %8, %9 : vector<8x128xf32>
    %cst_9 = arith.constant dense<0.000000e+00> : vector<8x256xf32>
    %11 = tpu.matmul %10, %3, %cst_9 {dimension_numbers = #tpu.dot_dimension_numbers<[1], [0], [0], [1], [0, 0, 1, 1], [], []>} : vector<8x128xf32>, vector<128x256xf32>, vector<8x256xf32> -> vector<8x256xf32>
    %12 = vector.broadcast %5 : vector<1x256xf32> to vector<8x256xf32>
    %13 = arith.addf %11, %12 : vector<8x256xf32>
    %14 = vector.extract_strided_slice %13 {offsets = [0, 0], sizes = [8, 128], strides = [1, 1]} : vector<8x256xf32> to vector<8x128xf32>
    %15 = math.tanh %14 : vector<8x128xf32>
    %cst_10 = arith.constant 2.000000e+00 : f32
    %16 = vector.broadcast %cst_10 : f32 to vector<8x128xf32>
    %17 = arith.mulf %15, %16 : vector<8x128xf32>
    %18 = vector.extract_strided_slice %13 {offsets = [0, 128], sizes = [8, 128], strides = [1, 1]} : vector<8x256xf32> to vector<8x128xf32>
    %19 = math.exp %18 : vector<8x128xf32>
    %cst_11 = arith.constant 1.000000e+00 : f32
    %20 = vector.broadcast %cst_11 : f32 to vector<8x128xf32>
    %21 = arith.addf %20, %19 : vector<8x128xf32>
    %22 = arith.mulf %21, %1 : vector<8x128xf32>
    %23 = arith.addf %17, %22 : vector<8x128xf32>
    %c0_12 = arith.constant 0 : index
    %c0_13 = arith.constant 0 : index
    %24 = vector.load %arg2[%c0_12, %c0_13] : memref<8x384xf32, #tpu.memory_space<vmem>>, vector<8x128xf32>
    tpu.vector_store %arg2[%c0_12, %c0_13], %23 {strides = array<i32>} : memref<8x384xf32, #tpu.memory_space<vmem>>, vector<8x128xf32>,
    %c0_14 = arith.constant 0 : index
    %c128_15 = arith.constant 128 : index
    %25 = vector.load %arg2[%c0_14, %c128_15] : memref<8x384xf32, #tpu.memory_space<vmem>>, vector<8x128xf32>
    tpu.vector_store %arg2[%c0_14, %c128_15], %17 {strides = array<i32>} : memref<8x384xf32, #tpu.memory_space<vmem>>, vector<8x128xf32>,
    %c0_16 = arith.constant 0 : index
    %c256_17 = arith.constant 256 : index
    %26 = vector.load %arg2[%c0_16, %c256_17] : memref<8x384xf32, #tpu.memory_space<vmem>>, vector<8x128xf32>
    tpu.vector_store %arg2[%c0_16, %c256_17], %21 {strides = array<i32>} : memref<8x384xf32, #tpu.memory_space<vmem>>, vector<8x128xf32>,
    return
  }
}

</mosaic_0001>

<bundles_post_ra>
// kernel: actor_forward.1
= control target key start
LH: loop header
LB: loop body
LE: loop exit
PB: predicated region body
PF: predicated region fallthrough
CT: control target
= control target key end

     0   :  { %7 = vsyncpa [#allocation3], 0  ;;  %s329_s9 = smov [#allocation2]   ;;  %s385_s0 = inlined_call_operand.vmem [shape: f32[8,256], index: 0, kind: input, shape index: {}]   ;;  %s386_s1 = inlined_call_operand.hbm [shape: f32[272,256], index: 1, kind: input, shape index: {}]   ;;  %s387_s2 = inlined_call_operand.vmem [shape: f32[8,384], index: 2, kind: output, shape index: {}]  }
   0x1   :  { %s15_s10 = sshll.u32 %s329_s9, 4  ;;  %s16_s10 = int_to_ptr.vmem [resolvable:$true] %s15_s10 }
   0x2   :  { %s315_s11 = scalar_lea.vmem %s16_s10, 8704  ;;  %p320_p1 = scmp.lt.s32.totalorder %s16_s10, %s16_s10 }
   0x3   :  { %p316_p0 = scmp.ne.s32.totalorder %s16_s10, %s315_s11  ;;  %p321_p2 = scmp.lt.s32.totalorder %s315_s11, %s315_s11 }
   0x5   :  { %p322_p3 = por %p321_p2, %p320_p1 }
   0x7   :  { %p323_p4 = pnand %p322_p3, %p316_p0 }
   0x9   :  { %326 = shalt.err (!%p323_p4)
}
   0xa   :  { %s330_s12 = smov 256   ;;  %s331_s13 = smov 16  }
   0xb   :  { %21 = dma.hbm_to_vmem [thread:$0]  %s386_s1, 8704, %s16_s10, [#allocation3], %s330_s12, %s330_s12, %s331_s13  }
   0xc   :  { %327 = dma.done.wait [#allocation3], 8704  }
   0xd   :  { %328 = vsyncadd [#allocation3], 4294958592  ;;  %v332_v0 = vmov 0.0   ;;  %vm333_vm0 = vmmov 0   ;;  %v42_v1 = vld [vmem:[#allocation2 + $0xf0] sm:$0xff]  ;;  %v41_v2 = vld [vmem:[#allocation2 + $0xe0] sm:$0xff]  ;;  %v150_v55 = vlaneseq }
   0xe   :  { %263 = vmatprep.subr.mxu0 %v332_v0  ;;  %295 = vmatprep.mubr.msk.f32.mxu0 %vm333_vm0, %v332_v0  ;;  %v40_v3 = vld [vmem:[#allocation2 + $0xd0] sm:$0xff]  ;;  %v39_v4 = vld [vmem:[#allocation2 + $0xc0] sm:$0xff]  ;;  %v74_v6 = vld [vmem:[#allocation2 + $0x1f8] sm:$0xff] }
   0xf   :  { %224 = vmatprep.mubr.f32.mxu1 %v332_v0  ;;  %264 = vmatpush3.msra.mxu0 %v42_v1  ;;  %v38_v5 = vld [vmem:[#allocation2 + $0xb0] sm:$0xff]  ;;  %v72_v8 = vld [vmem:[#allocation2 + $0x1e8] sm:$0xff]  ;;  %v71_v9 = vld [vmem:[#allocation2 + $0x1e0] sm:$0xff]  ;;  %v151_v56 = vshrl.u32 %v150_v55, 7 }
  0x10   :  { %265 = vmatprep.subr.mxu0 %v332_v0  ;;  %160 = vmatprep.subr.mxu1 %v74_v6  ;;  %v73_v7 = vld [vmem:[#allocation2 + $0x1f0] sm:$0xff]  ;;  %v70_v10 = vld [vmem:[#allocation2 + $0x1d8] sm:$0xff]  ;;  %v37_v11 = vld [vmem:[#allocation2 + $0xa0] sm:$0xff] }
  0x11   :  { %266 = vmatpush3.msra.mxu0 %v41_v2  ;;  %161 = vmatpush1.msra.mxu1 %v73_v7  ;;  %v69_v12 = vld [vmem:[#allocation2 + $0x1d0] sm:$0xff]  ;;  %v68_v13 = vld [vmem:[#allocation2 + $0x1c8] sm:$0xff]  ;;  %v67_v15 = vld [vmem:[#allocation2 + $0x1c0] sm:$0xff]  ;;  %v152_v57 = vsub.s32 0, %v151_v56  ;;  %v156_v59 = vsub.s32 1, %v151_v56 }
  0x12   :  { %267 = vmatprep.subr.mxu0 %v332_v0  ;;  %162 = vmatprep.subr.mxu1 %v72_v8  ;;  %v36_v14 = vld [vmem:[#allocation2 + $0x90] sm:$0xff]  ;;  %v66_v16 = vld [vmem:[#allocation2 + $0x1b8] sm:$0xff]  ;;  %v35_v17 = vld [vmem:[#allocation2 + $0x80] sm:$0xff] }
  0x13   :  { %268 = vmatpush3.msra.mxu0 %v40_v3  ;;  %163 = vmatpush1.msra.mxu1 %v71_v9  ;;  %v65_v18 = vld [vmem:[#allocation2 + $0x1b0] sm:$0xff]  ;;  %v64_v19 = vld [vmem:[#allocation2 + $0x1a8] sm:$0xff]  ;;  %v63_v21 = vld [vmem:[#allocation2 + $0x1a0] sm:$0xff] }
  0x14   :  { %269 = vmatprep.subr.mxu0 %v332_v0  ;;  %164 = vmatprep.subr.mxu1 %v70_v10  ;;  %v34_v20 = vld [vmem:[#allocation2 + $0x70] sm:$0xff]  ;;  %v62_v22 = vld [vmem:[#allocation2 + $0x198] sm:$0xff]  ;;  %v33_v23 = vld [vmem:[#allocation2 + $0x60] sm:$0xff] }
  0x15   :  { %270 = vmatpush3.msra.mxu0 %v39_v4  ;;  %165 = vmatpush1.msra.mxu1 %v69_v12  ;;  %v61_v24 = vld [vmem:[#allocation2 + $0x190] sm:$0xff]  ;;  %v60_v25 = vld [vmem:[#allocation2 + $0x188] sm:$0xff]  ;;  %v59_v27 = vld [vmem:[#allocation2 + $0x180] sm:$0xff] }
  0x16   :  { %271 = vmatprep.subr.mxu0 %v332_v0  ;;  %166 = vmatprep.subr.mxu1 %v68_v13  ;;  %v32_v26 = vld [vmem:[#allocation2 + $0x50] sm:$0xff]  ;;  %v58_v28 = vld [vmem:[#allocation2 + $0x178] sm:$0xff]  ;;  %v31_v29 = vld [vmem:[#allocation2 + $0x40] sm:$0xff] }
  0x17   :  { %272 = vmatpush3.msra.mxu0 %v38_v5  ;;  %167 = vmatpush1.msra.mxu1 %v67_v15  ;;  %v57_v30 = vld [vmem:[#allocation2 + $0x170] sm:$0xff]  ;;  %v56_v31 = vld [vmem:[#allocation2 + $0x168] sm:$0xff]  ;;  %v55_v33 = vld [vmem:[#allocation2 + $0x160] sm:$0xff] }
  0x18   :  { %273 = vmatprep.subr.mxu0 %v332_v0  ;;  %168 = vmatprep.subr.mxu1 %v66_v16  ;;  %v30_v32 = vld [vmem:[#allocation2 + $0x30] sm:$0xff]  ;;  %v54_v34 = vld [vmem:[#allocation2 + $0x158] sm:$0xff]  ;;  %v29_v35 = vld [vmem:[#allocation2 + $0x20] sm:$0xff] }
  0x19   :  { %274 = vmatpush3.msra.mxu0 %v37_v11  ;;  %169 = vmatpush1.msra.mxu1 %v65_v18  ;;  %v53_v36 = vld [vmem:[#allocation2 + $0x150] sm:$0xff]  ;;  %v52_v37 = vld [vmem:[#allocation2 + $0x148] sm:$0xff]  ;;  %v51_v39 = vld [vmem:[#allocation2 + $0x140] sm:$0xff] }
  0x1a   :  { %275 = vmatprep.subr.mxu0 %v332_v0  ;;  %170 = vmatprep.subr.mxu1 %v64_v19  ;;  %v28_v38 = vld [vmem:[#allocation2 + $0x10] sm:$0xff]  ;;  %v50_v40 = vld [vmem:[#allocation2 + $0x138] sm:$0xff]  ;;  %v27_v41 = vld [vmem:[#allocation2] sm:$0xff] }
  0x1b   :  { %276 = vmatpush3.msra.mxu0 %v36_v14  ;;  %171 = vmatpush1.msra.mxu1 %v63_v21  ;;  %v49_v42 = vld [vmem:[#allocation2 + $0x130] sm:$0xff]  ;;  %v25_v43 = vld [vmem:[%s385_s0] sm:$0xff]  ;;  %v48_v44 = vld [vmem:[#allocation2 + $0x128] sm:$0xff] }
  0x1c   :  { %277 = vmatprep.subr.mxu0 %v332_v0  ;;  %172 = vmatprep.subr.mxu1 %v62_v22  ;;  %v47_v45 = vld [vmem:[#allocation2 + $0x120] sm:$0xff]  ;;  %v46_v46 = vld [vmem:[#allocation2 + $0x118] sm:$0xff]  ;;  %v45_v47 = vld [vmem:[#allocation2 + $0x110] sm:$0xff] }
  0x1d   :  { %278 = vmatpush3.msra.mxu0 %v35_v17  ;;  %173 = vmatpush1.msra.mxu1 %v61_v24  ;;  %v44_v48 = vld [vmem:[#allocation2 + $0x108] sm:$0xff]  ;;  %v43_v49 = vld [vmem:[#allocation2 + $0x100] sm:$0xff]  ;;  %v77_v58 = vld [vmem:[#allocation2 + $0x210] ss:$8 sm:$0x3] }
  0x1e   :  { %279 = vmatprep.subr.mxu0 %v332_v0  ;;  %174 = vmatprep.subr.mxu1 %v60_v25  ;;  %v75_v50 = vld [vmem:[#allocation2 + $0x200] ss:$0 sm:$0xff]  ;;  %v153_v60 = vrot.slane %v77_v58, %v152_v57  ;;  %v157_v61 = vrot.slane %v77_v58, %v156_v59  ;;  %v26_v6 = vld [vmem:[%s385_s0 + $0x8] sm:$0xff] }
  0x1f   :  { %280 = vmatpush3.msra.mxu0 %v34_v20  ;;  %175 = vmatpush1.msra.mxu1 %v59_v27 }
  0x20   :  { %281 = vmatprep.subr.mxu0 %v332_v0  ;;  %176 = vmatprep.subr.mxu1 %v58_v28 }
  0x21   :  { %282 = vmatpush3.msra.mxu0 %v33_v23  ;;  %177 = vmatpush1.msra.mxu1 %v57_v30 }
  0x22   :  { %283 = vmatprep.subr.mxu0 %v332_v0  ;;  %178 = vmatprep.subr.mxu1 %v56_v31 }
  0x23   :  { %284 = vmatpush3.msra.mxu0 %v32_v26  ;;  %179 = vmatpush1.msra.mxu1 %v55_v33 }
  0x24   :  { %285 = vmatprep.subr.mxu0 %v332_v0  ;;  %180 = vmatprep.subr.mxu1 %v54_v34 }
  0x25   :  { %286 = vmatpush3.msra.mxu0 %v31_v29  ;;  %181 = vmatpush1.msra.mxu1 %v53_v36 }
  0x26   :  { %287 = vmatprep.subr.mxu0 %v332_v0  ;;  %182 = vmatprep.subr.mxu1 %v52_v37 }
  0x27   :  { %288 = vmatpush3.msra.mxu0 %v30_v32  ;;  %183 = vmatpush1.msra.mxu1 %v51_v39 }
  0x28   :  { %289 = vmatprep.subr.mxu0 %v332_v0  ;;  %184 = vmatprep.subr.mxu1 %v50_v40 }
  0x29   :  { %290 = vmatpush3.msra.mxu0 %v29_v35  ;;  %185 = vmatpush1.msra.mxu1 %v49_v42 }
  0x2a   :  { %291 = vmatprep.subr.mxu0 %v332_v0  ;;  %186 = vmatprep.subr.mxu1 %v48_v44 }
  0x2b   :  { %292 = vmatpush3.msra.mxu0 %v28_v38  ;;  %187 = vmatpush1.msra.mxu1 %v47_v45 }
  0x2c   :  { %293 = vmatprep.subr.mxu0 %v332_v0  ;;  %188 = vmatprep.subr.mxu1 %v46_v46 }
  0x2d   :  { %294 = vmatpush3.msra.mxu0 %v27_v41  ;;  %189 = vmatpush1.msra.mxu1 %v45_v47 }
  0x2e   :  { %296 = vmatmul.mubr.f32.vlgmr.msra.gmra.mxu0 %v25_v43  ;;  %190 = vmatprep.subr.mxu1 %v44_v48 }
  0x2f   :  { %191 = vmatpush1.msra.mxu1 %v43_v49 }
  0xee   :  { %v144_v51 = vpop.f32.mrf.mxu0 }
  0xef   :  { %v145_v52 = vadd.f32 %v144_v51, %v75_v50 }
  0xf0   :  { %v297_v53 = vpop.f32.mrf.mxu0 }
  0xf1   :  { %v148_v54 = vmax.f32 %v145_v52, 0.0 }
  0xf3   :  { %225 = vmatmul.mubr.f32.vlgmr.msra.gmra.mxu1 %v148_v54 }
 0x1b3   :  { %v226_v62 = vpop.f32.mrf.mxu1 }
 0x1b4   :  { %v227_v63 = vadd.f32 %v226_v62, %v153_v60 }
 0x1b5   :  { %v228_v0 = vpop.f32.mrf.mxu1 }
 0x1b6   :  { %303 = vtanh.f32 %v227_v63  ;;  %v229_v1 = vadd.f32 %v228_v0, %v157_v61 }
 0x1b8   :  { %v233_v2 = vmul.f32 1.442695, %v229_v1 }
 0x1ba   :  { %305 = vpow2.f32 %v233_v2 }
 0x1c3   :  { %v304_v3 = vpop.eup %303 }
 0x1c4   :  { %v232_v4 = vmul.f32 2.0, %v304_v3 }
 0x1c6   :  { %239 = vst [vmem:[%s387_s2 + $0x8] sm:$0xff] %v232_v4 }
 0x1c7   :  { %v306_v5 = vpop.eup %305 }
 0x1c8   :  { %v235_v7 = vadd.f32 1.0, %v306_v5 }
 0x1ca   :  { %v236_v8 = vmul.f32 %v235_v7, %v26_v6  ;;  %240 = vst [vmem:[%s387_s2 + $0x10] sm:$0xff] %v235_v7 }
 0x1cc   :  { %v237_v9 = vadd.f32 %v236_v8, %v232_v4 }
 0x1ce   :  { %238 = vst [vmem:[%s387_s2] sm:$0xff] %v237_v9 }
 0x1cf   :  { %245 = vsyncpa [#allocation3], 1 }

</bundles_post_ra>
